<compile_context>
chip_gen: v5e
topology: v5e:2x2
jax: 0.10.0
libtpu: 0.0.40
codegen_flags: <defaults>
</compile_context>

<pallas_src>
import jax
import jax.numpy as jnp
from jax.experimental import pallas as pl
from jax.experimental.pallas import tpu as pltpu


def _round_up(x, m):
    return ((x + m - 1) // m) * m


# ---------------------------------------------------------------------------
# Kernel: one grid step == one timestep of the GRU RNN.
#   obs_ref : (1, Bp, P)   timestep t's (padded) observations
#   h0_ref  : (Bp, P)      initial hidden state (padded), read only at t == 0
#   w_ref   : (8, P, P)    [w1, w_ih_r, w_ih_z, w_ih_n, w_hh_r, w_hh_z, w_hh_n, w2]
#   b_ref   : (8, P)       matching biases
#   q_ref   : (1, Bp, P)   q output for timestep t (lane-dense, sliced by wrapper)
#   h_ref   : (Bp, P)      resident hidden-state carry / final hidden output
# ---------------------------------------------------------------------------
def rnn_seq_kernel(obs_ref, h0_ref, w_ref, b_ref, q_ref, h_ref):
    t = pl.program_id(0)

    @pl.when(t == 0)
    def _():
        h_ref[...] = h0_ref[...]

    x_in = obs_ref[0]          # (Bp, P)
    h = h_ref[...]             # (Bp, P)
    b = b_ref[...]             # (8, P)

    # fc1 + ReLU
    x = jnp.dot(x_in, w_ref[0], preferred_element_type=jnp.float32) + b[0:1]
    x = jnp.maximum(x, 0.0)

    # GRUCell, PyTorch gate order (r, z, n), per-gate lane-aligned weights.
    r = jax.nn.sigmoid(
        jnp.dot(x, w_ref[1], preferred_element_type=jnp.float32) + b[1:2]
        + jnp.dot(h, w_ref[4], preferred_element_type=jnp.float32) + b[4:5])
    z = jax.nn.sigmoid(
        jnp.dot(x, w_ref[2], preferred_element_type=jnp.float32) + b[2:3]
        + jnp.dot(h, w_ref[5], preferred_element_type=jnp.float32) + b[5:6])
    n_h = jnp.dot(h, w_ref[6], preferred_element_type=jnp.float32) + b[6:7]
    n = jnp.tanh(
        jnp.dot(x, w_ref[3], preferred_element_type=jnp.float32) + b[3:4] + r * n_h)
    h_new = (1.0 - z) * n + z * h

    # fc2
    q = jnp.dot(h_new, w_ref[7], preferred_element_type=jnp.float32) + b[7:8]

    q_ref[0] = q
    h_ref[...] = h_new


# ---------------------------------------------------------------------------
# One-time parameter packing (hoists transposes / gate splits / padding out of
# the per-call path).  params are in torch layout: w* = (out, in), b* = (out,).
# ---------------------------------------------------------------------------
def pack_params(params):
    H, IN = params["w1"].shape
    A = params["w2"].shape[0]
    P = _round_up(max(IN, H, A), 128)

    def padw(w_in_out):
        i, o = w_in_out.shape
        return jnp.zeros((P, P), jnp.float32).at[:i, :o].set(w_in_out)

    def padb(bias):
        return jnp.zeros((P,), jnp.float32).at[: bias.shape[0]].set(bias)

    wih, whh = params["w_ih"], params["w_hh"]          # (3H, H) each, rows = [r|z|n]
    W = jnp.stack(
        [
            padw(params["w1"].T),                       # fc1: (IN, H)
            padw(wih[0:H].T), padw(wih[H:2 * H].T), padw(wih[2 * H:3 * H].T),
            padw(whh[0:H].T), padw(whh[H:2 * H].T), padw(whh[2 * H:3 * H].T),
            padw(params["w2"].T),                       # fc2: (H, A)
        ],
        axis=0,
    )                                                   # (8, P, P)
    bih, bhh = params["b_ih"], params["b_hh"]
    Bv = jnp.stack(
        [
            padb(params["b1"]),
            padb(bih[0:H]), padb(bih[H:2 * H]), padb(bih[2 * H:3 * H]),
            padb(bhh[0:H]), padb(bhh[H:2 * H]), padb(bhh[2 * H:3 * H]),
            padb(params["b2"]),
        ],
        axis=0,
    )                                                   # (8, P)
    return {"W": W, "b": Bv, "dims": (IN, H, A), "P": P}


# ---------------------------------------------------------------------------
# Fused multi-step forward: obs_seq (T, B, IN), hidden (B, H) or (1, B, H)
#   -> q_seq (T, B, A), h_T (B, H)
# ---------------------------------------------------------------------------
def rnn_forward_seq(obs_seq, hidden_state, packed):
    IN, H, A = packed["dims"]
    P = packed["P"]
    T, B = obs_seq.shape[0], obs_seq.shape[1]
    Bp = _round_up(max(B, 8), 8)

    obs_p = jnp.zeros((T, Bp, P), jnp.float32).at[:, :B, :IN].set(
        obs_seq.astype(jnp.float32))
    h0 = hidden_state.reshape(-1, H).astype(jnp.float32)
    h0_p = jnp.zeros((Bp, P), jnp.float32).at[:B, :H].set(h0)

    grid_spec = pltpu.PrefetchScalarGridSpec(
        num_scalar_prefetch=0,
        grid=(T,),
        in_specs=[
            pl.BlockSpec((1, Bp, P), lambda t: (t, 0, 0)),   # obs, streamed per step
            pl.BlockSpec((Bp, P), lambda t: (0, 0)),         # h0, resident
            pl.BlockSpec((8, P, P), lambda t: (0, 0, 0)),    # weights, resident
            pl.BlockSpec((8, P), lambda t: (0, 0)),          # biases, resident
        ],
        out_specs=(
            pl.BlockSpec((1, Bp, P), lambda t: (t, 0, 0)),   # q per step (lane-dense)
            pl.BlockSpec((Bp, P), lambda t: (0, 0)),         # hidden carry / h_T
        ),
    )

    q_seq_p, h_p = pl.pallas_call(
        rnn_seq_kernel,
        out_shape=(
            jax.ShapeDtypeStruct((T, Bp, P), jnp.float32),
            jax.ShapeDtypeStruct((Bp, P), jnp.float32),
        ),
        grid_spec=grid_spec,
        input_output_aliases={1: 1},   # h_T overwrites the padded h0 buffer
        compiler_params=pltpu.CompilerParams(
            dimension_semantics=("arbitrary",)),
    )(obs_p, h0_p, packed["W"], packed["b"])

    return q_seq_p[:, :B, :A], h_p[:B, :H]


# Single-step API matching the PyTorch module's forward(obs, hidden_state).
def rnn_forward(obs, hidden_state, packed):
    q_seq, h = rnn_forward_seq(obs[None], hidden_state, packed)
    return q_seq[0], h


# ---------------------------------------------------------------------------
# Parameter init (torch default uniform init) and pure-JAX reference.
# ---------------------------------------------------------------------------
def init_params(key, input_shape, rnn_dim, n_actions):
    ks = jax.random.split(key, 8)

    def u(k, shape, fan_in):
        bound = 1.0 / (fan_in ** 0.5)
        return jax.random.uniform(k, shape, jnp.float32, -bound, bound)

    return {
        "w1": u(ks[0], (rnn_dim, input_shape), input_shape),
        "b1": u(ks[1], (rnn_dim,), input_shape),
        "w_ih": u(ks[2], (3 * rnn_dim, rnn_dim), rnn_dim),
        "b_ih": u(ks[3], (3 * rnn_dim,), rnn_dim),
        "w_hh": u(ks[4], (3 * rnn_dim, rnn_dim), rnn_dim),
        "b_hh": u(ks[5], (3 * rnn_dim,), rnn_dim),
        "w2": u(ks[6], (n_actions, rnn_dim), rnn_dim),
        "b2": u(ks[7], (n_actions,), rnn_dim),
    }


def rnn_forward_ref(obs, hidden_state, params):
    """Pure-JAX reference mirroring torch semantics (one step)."""
    H = params["w1"].shape[0]
    h = hidden_state.reshape(-1, H)
    x = jnp.maximum(obs @ params["w1"].T + params["b1"], 0.0)
    gi = x @ params["w_ih"].T + params["b_ih"]
    gh = h @ params["w_hh"].T + params["b_hh"]
    r = jax.nn.sigmoid(gi[:, :H] + gh[:, :H])
    z = jax.nn.sigmoid(gi[:, H:2 * H] + gh[:, H:2 * H])
    n = jnp.tanh(gi[:, 2 * H:] + r * gh[:, 2 * H:])
    h_new = (1.0 - z) * n + z * h
    q = h_new @ params["w2"].T + params["b2"]
    return q, h_new


if __name__ == "__main__":
    B, IN, H, A, T = 8, 48, 32, 6, 12   # batch, input_shape, rnn_dim, n_actions, seq

    key = jax.random.PRNGKey(0)
    k_obs, k_h, k_p = jax.random.split(key, 3)
    obs_seq = jax.random.normal(k_obs, (T, B, IN), jnp.float32)
    hidden0 = jax.random.normal(k_h, (B, H), jnp.float32)
    params = init_params(k_p, IN, H, A)
    packed = pack_params(params)   # one-time: transpose/split/pad/coalesce

    # --- single-step (exact module semantics) ---
    q1, h1 = jax.block_until_ready(rnn_forward(obs_seq[0], hidden0, packed))
    q1_ref, h1_ref = rnn_forward_ref(obs_seq[0], hidden0, params)
    assert q1.shape == (B, A) and h1.shape == (B, H)
    assert jnp.allclose(q1, q1_ref, atol=1e-4, rtol=1e-4), "single-step q mismatch"
    assert jnp.allclose(h1, h1_ref, atol=1e-4, rtol=1e-4), "single-step h mismatch"

    # --- fused sequence (time loop inside the kernel grid) ---
    q_seq, h_T = jax.block_until_ready(rnn_forward_seq(obs_seq, hidden0, packed))
    h_r = hidden0
    q_list = []
    for t in range(T):
        q_t, h_r = rnn_forward_ref(obs_seq[t], h_r, params)
        q_list.append(q_t)
    q_seq_ref = jnp.stack(q_list)
    assert q_seq.shape == (T, B, A) and h_T.shape == (B, H)
    assert jnp.allclose(q_seq, q_seq_ref, atol=1e-4, rtol=1e-4), "seq q mismatch"
    assert jnp.allclose(h_T, h_r, atol=1e-4, rtol=1e-4), "seq h mismatch"

    print("KERNEL_OK")
</pallas_src>

<mosaic_0001>
module attributes {stable_mosaic.version = 11 : i64} {
  func.func @rnn_seq_kernel(%arg0: i32, %arg1: memref<1x8x128xf32, #tpu.memory_space<vmem>>, %arg2: memref<8x128xf32, #tpu.memory_space<vmem>>, %arg3: memref<8x128x128xf32, #tpu.memory_space<vmem>>, %arg4: memref<8x128xf32, #tpu.memory_space<vmem>>, %arg5: memref<1x8x128xf32, #tpu.memory_space<vmem>>, %arg6: memref<8x128xf32, #tpu.memory_space<vmem>>) attributes {dimension_semantics = [#tpu.dimension_semantics<arbitrary>], iteration_bounds = array<i64: 1>, scalar_prefetch = 0 : i64, scratch_operands = 0 : i64, tpu.core_type = #tpu.core_type<tc>, window_params = [{transform_indices = @transform_0, window_bounds = array<i64: 1, 8, 128>}, {pipeline_mode = #tpu.pipeline_mode<synchronous>, transform_indices = @transform_1, window_bounds = array<i64: 8, 128>}, {pipeline_mode = #tpu.pipeline_mode<synchronous>, transform_indices = @transform_2, window_bounds = array<i64: 8, 128, 128>}, {pipeline_mode = #tpu.pipeline_mode<synchronous>, transform_indices = @transform_3, window_bounds = array<i64: 8, 128>}, {transform_indices = @transform_4, window_bounds = array<i64: 1, 8, 128>}, {pipeline_mode = #tpu.pipeline_mode<synchronous>, transform_indices = @transform_5, window_bounds = array<i64: 8, 128>}]} {
    %c0_i32 = arith.constant 0 : i32
    %0 = arith.cmpi eq, %arg0, %c0_i32 : i32
    %1 = arith.extui %0 : i1 to i32
    %c0_i32_0 = arith.constant 0 : i32
    %2 = arith.cmpi ne, %1, %c0_i32_0 : i32
    scf.if %2 {
      %c0_40 = arith.constant 0 : index
      %c0_41 = arith.constant 0 : index
      %81 = vector.load %arg2[%c0_40, %c0_41] : memref<8x128xf32, #tpu.memory_space<vmem>>, vector<8x128xf32>
      %c0_42 = arith.constant 0 : index
      %c0_43 = arith.constant 0 : index
      %82 = vector.load %arg6[%c0_42, %c0_43] : memref<8x128xf32, #tpu.memory_space<vmem>>, vector<8x128xf32>
      tpu.vector_store %arg6[%c0_42, %c0_43], %81 {strides = array<i32>} : memref<8x128xf32, #tpu.memory_space<vmem>>, vector<8x128xf32>,
    } else {
    }
    %c0 = arith.constant 0 : index
    %c0_1 = arith.constant 0 : index
    %c0_2 = arith.constant 0 : index
    %3 = vector.load %arg1[%c0, %c0_1, %c0_2] : memref<1x8x128xf32, #tpu.memory_space<vmem>>, vector<1x8x128xf32>
    %4 = vector.shape_cast %3 : vector<1x8x128xf32> to vector<8x128xf32>
    %c0_3 = arith.constant 0 : index
    %c0_4 = arith.constant 0 : index
    %5 = vector.load %arg6[%c0_3, %c0_4] : memref<8x128xf32, #tpu.memory_space<vmem>>, vector<8x128xf32>
    %c0_5 = arith.constant 0 : index
    %c0_6 = arith.constant 0 : index
    %6 = vector.load %arg4[%c0_5, %c0_6] : memref<8x128xf32, #tpu.memory_space<vmem>>, vector<8x128xf32>
    %c0_7 = arith.constant 0 : index
    %c0_8 = arith.constant 0 : index
    %c0_9 = arith.constant 0 : index
    %7 = vector.load %arg3[%c0_7, %c0_8, %c0_9] : memref<8x128x128xf32, #tpu.memory_space<vmem>>, vector<1x128x128xf32>
    %8 = vector.shape_cast %7 : vector<1x128x128xf32> to vector<128x128xf32>
    %cst = arith.constant dense<0.000000e+00> : vector<8x128xf32>
    %9 = tpu.matmul %4, %8, %cst {dimension_numbers = #tpu.dot_dimension_numbers<[1], [0], [0], [1], [0, 0, 1, 1], [], []>} : vector<8x128xf32>, vector<128x128xf32>, vector<8x128xf32> -> vector<8x128xf32>
    %10 = vector.extract_strided_slice %6 {offsets = [0, 0], sizes = [1, 128], strides = [1, 1]} : vector<8x128xf32> to vector<1x128xf32>
    %11 = vector.broadcast %10 : vector<1x128xf32> to vector<8x128xf32>
    %12 = arith.addf %9, %11 : vector<8x128xf32>
    %cst_10 = arith.constant 0.000000e+00 : f32
    %13 = vector.broadcast %cst_10 : f32 to vector<8x128xf32>
    %14 = arith.maximumf %12, %13 : vector<8x128xf32>
    %c1 = arith.constant 1 : index
    %c0_11 = arith.constant 0 : index
    %c0_12 = arith.constant 0 : index
    %15 = vector.load %arg3[%c1, %c0_11, %c0_12] : memref<8x128x128xf32, #tpu.memory_space<vmem>>, vector<1x128x128xf32>
    %16 = vector.shape_cast %15 : vector<1x128x128xf32> to vector<128x128xf32>
    %cst_13 = arith.constant dense<0.000000e+00> : vector<8x128xf32>
    %17 = tpu.matmul %14, %16, %cst_13 {dimension_numbers = #tpu.dot_dimension_numbers<[1], [0], [0], [1], [0, 0, 1, 1], [], []>} : vector<8x128xf32>, vector<128x128xf32>, vector<8x128xf32> -> vector<8x128xf32>
    %18 = vector.extract_strided_slice %6 {offsets = [1, 0], sizes = [1, 128], strides = [1, 1]} : vector<8x128xf32> to vector<1x128xf32>
    %19 = vector.broadcast %18 : vector<1x128xf32> to vector<8x128xf32>
    %20 = arith.addf %17, %19 : vector<8x128xf32>
    %c4 = arith.constant 4 : index
    %c0_14 = arith.constant 0 : index
    %c0_15 = arith.constant 0 : index
    %21 = vector.load %arg3[%c4, %c0_14, %c0_15] : memref<8x128x128xf32, #tpu.memory_space<vmem>>, vector<1x128x128xf32>
    %22 = vector.shape_cast %21 : vector<1x128x128xf32> to vector<128x128xf32>
    %cst_16 = arith.constant dense<0.000000e+00> : vector<8x128xf32>
    %23 = tpu.matmul %5, %22, %cst_16 {dimension_numbers = #tpu.dot_dimension_numbers<[1], [0], [0], [1], [0, 0, 1, 1], [], []>} : vector<8x128xf32>, vector<128x128xf32>, vector<8x128xf32> -> vector<8x128xf32>
    %24 = arith.addf %20, %23 : vector<8x128xf32>
    %25 = vector.extract_strided_slice %6 {offsets = [4, 0], sizes = [1, 128], strides = [1, 1]} : vector<8x128xf32> to vector<1x128xf32>
    %26 = vector.broadcast %25 : vector<1x128xf32> to vector<8x128xf32>
    %27 = arith.addf %24, %26 : vector<8x128xf32>
    %28 = arith.negf %27 : vector<8x128xf32>
    %29 = math.exp %28 : vector<8x128xf32>
    %cst_17 = arith.constant 1.000000e+00 : f32
    %30 = vector.broadcast %cst_17 : f32 to vector<8x128xf32>
    %31 = arith.addf %30, %29 : vector<8x128xf32>
    %32 = arith.divf %30, %31 : vector<8x128xf32>
    %c2 = arith.constant 2 : index
    %c0_18 = arith.constant 0 : index
    %c0_19 = arith.constant 0 : index
    %33 = vector.load %arg3[%c2, %c0_18, %c0_19] : memref<8x128x128xf32, #tpu.memory_space<vmem>>, vector<1x128x128xf32>
    %34 = vector.shape_cast %33 : vector<1x128x128xf32> to vector<128x128xf32>
    %cst_20 = arith.constant dense<0.000000e+00> : vector<8x128xf32>
    %35 = tpu.matmul %14, %34, %cst_20 {dimension_numbers = #tpu.dot_dimension_numbers<[1], [0], [0], [1], [0, 0, 1, 1], [], []>} : vector<8x128xf32>, vector<128x128xf32>, vector<8x128xf32> -> vector<8x128xf32>
    %36 = vector.extract_strided_slice %6 {offsets = [2, 0], sizes = [1, 128], strides = [1, 1]} : vector<8x128xf32> to vector<1x128xf32>
    %37 = vector.broadcast %36 : vector<1x128xf32> to vector<8x128xf32>
    %38 = arith.addf %35, %37 : vector<8x128xf32>
    %c5 = arith.constant 5 : index
    %c0_21 = arith.constant 0 : index
    %c0_22 = arith.constant 0 : index
    %39 = vector.load %arg3[%c5, %c0_21, %c0_22] : memref<8x128x128xf32, #tpu.memory_space<vmem>>, vector<1x128x128xf32>
    %40 = vector.shape_cast %39 : vector<1x128x128xf32> to vector<128x128xf32>
    %cst_23 = arith.constant dense<0.000000e+00> : vector<8x128xf32>
    %41 = tpu.matmul %5, %40, %cst_23 {dimension_numbers = #tpu.dot_dimension_numbers<[1], [0], [0], [1], [0, 0, 1, 1], [], []>} : vector<8x128xf32>, vector<128x128xf32>, vector<8x128xf32> -> vector<8x128xf32>
    %42 = arith.addf %38, %41 : vector<8x128xf32>
    %43 = vector.extract_strided_slice %6 {offsets = [5, 0], sizes = [1, 128], strides = [1, 1]} : vector<8x128xf32> to vector<1x128xf32>
    %44 = vector.broadcast %43 : vector<1x128xf32> to vector<8x128xf32>
    %45 = arith.addf %42, %44 : vector<8x128xf32>
    %46 = arith.negf %45 : vector<8x128xf32>
    %47 = math.exp %46 : vector<8x128xf32>
    %cst_24 = arith.constant 1.000000e+00 : f32
    %48 = vector.broadcast %cst_24 : f32 to vector<8x128xf32>
    %49 = arith.addf %48, %47 : vector<8x128xf32>
    %50 = arith.divf %48, %49 : vector<8x128xf32>
    %c6 = arith.constant 6 : index
    %c0_25 = arith.constant 0 : index
    %c0_26 = arith.constant 0 : index
    %51 = vector.load %arg3[%c6, %c0_25, %c0_26] : memref<8x128x128xf32, #tpu.memory_space<vmem>>, vector<1x128x128xf32>
    %52 = vector.shape_cast %51 : vector<1x128x128xf32> to vector<128x128xf32>
    %cst_27 = arith.constant dense<0.000000e+00> : vector<8x128xf32>
    %53 = tpu.matmul %5, %52, %cst_27 {dimension_numbers = #tpu.dot_dimension_numbers<[1], [0], [0], [1], [0, 0, 1, 1], [], []>} : vector<8x128xf32>, vector<128x128xf32>, vector<8x128xf32> -> vector<8x128xf32>
    %54 = vector.extract_strided_slice %6 {offsets = [6, 0], sizes = [1, 128], strides = [1, 1]} : vector<8x128xf32> to vector<1x128xf32>
    %55 = vector.broadcast %54 : vector<1x128xf32> to vector<8x128xf32>
    %56 = arith.addf %53, %55 : vector<8x128xf32>
    %c3 = arith.constant 3 : index
    %c0_28 = arith.constant 0 : index
    %c0_29 = arith.constant 0 : index
    %57 = vector.load %arg3[%c3, %c0_28, %c0_29] : memref<8x128x128xf32, #tpu.memory_space<vmem>>, vector<1x128x128xf32>
    %58 = vector.shape_cast %57 : vector<1x128x128xf32> to vector<128x128xf32>
    %cst_30 = arith.constant dense<0.000000e+00> : vector<8x128xf32>
    %59 = tpu.matmul %14, %58, %cst_30 {dimension_numbers = #tpu.dot_dimension_numbers<[1], [0], [0], [1], [0, 0, 1, 1], [], []>} : vector<8x128xf32>, vector<128x128xf32>, vector<8x128xf32> -> vector<8x128xf32>
    %60 = vector.extract_strided_slice %6 {offsets = [3, 0], sizes = [1, 128], strides = [1, 1]} : vector<8x128xf32> to vector<1x128xf32>
    %61 = vector.broadcast %60 : vector<1x128xf32> to vector<8x128xf32>
    %62 = arith.addf %59, %61 : vector<8x128xf32>
    %63 = arith.mulf %32, %56 : vector<8x128xf32>
    %64 = arith.addf %62, %63 : vector<8x128xf32>
    %65 = math.tanh %64 : vector<8x128xf32>
    %cst_31 = arith.constant 1.000000e+00 : f32
    %66 = vector.broadcast %cst_31 : f32 to vector<8x128xf32>
    %67 = arith.subf %66, %50 : vector<8x128xf32>
    %68 = arith.mulf %67, %65 : vector<8x128xf32>
    %69 = arith.mulf %50, %5 : vector<8x128xf32>
    %70 = arith.addf %68, %69 : vector<8x128xf32>
    %c7 = arith.constant 7 : index
    %c0_32 = arith.constant 0 : index
    %c0_33 = arith.constant 0 : index
    %71 = vector.load %arg3[%c7, %c0_32, %c0_33] : memref<8x128x128xf32, #tpu.memory_space<vmem>>, vector<1x128x128xf32>
    %72 = vector.shape_cast %71 : vector<1x128x128xf32> to vector<128x128xf32>
    %cst_34 = arith.constant dense<0.000000e+00> : vector<8x128xf32>
    %73 = tpu.matmul %70, %72, %cst_34 {dimension_numbers = #tpu.dot_dimension_numbers<[1], [0], [0], [1], [0, 0, 1, 1], [], []>} : vector<8x128xf32>, vector<128x128xf32>, vector<8x128xf32> -> vector<8x128xf32>
    %74 = vector.extract_strided_slice %6 {offsets = [7, 0], sizes = [1, 128], strides = [1, 1]} : vector<8x128xf32> to vector<1x128xf32>
    %75 = vector.broadcast %74 : vector<1x128xf32> to vector<8x128xf32>
    %76 = arith.addf %73, %75 : vector<8x128xf32>
    %c0_35 = arith.constant 0 : index
    %c0_36 = arith.constant 0 : index
    %c0_37 = arith.constant 0 : index
    %77 = vector.load %arg5[%c0_35, %c0_36, %c0_37] : memref<1x8x128xf32, #tpu.memory_space<vmem>>, vector<1x8x128xf32>
    %78 = vector.shape_cast %77 : vector<1x8x128xf32> to vector<8x128xf32>
    %79 = vector.shape_cast %76 : vector<8x128xf32> to vector<1x8x128xf32>
    tpu.vector_store %arg5[%c0_35, %c0_36, %c0_37], %79 {strides = array<i32>} : memref<1x8x128xf32, #tpu.memory_space<vmem>>, vector<1x8x128xf32>,
    %c0_38 = arith.constant 0 : index
    %c0_39 = arith.constant 0 : index
    %80 = vector.load %arg6[%c0_38, %c0_39] : memref<8x128xf32, #tpu.memory_space<vmem>>, vector<8x128xf32>
    tpu.vector_store %arg6[%c0_38, %c0_39], %70 {strides = array<i32>} : memref<8x128xf32, #tpu.memory_space<vmem>>, vector<8x128xf32>,
    return
  }
  func.func @transform_0(%arg0: i32) -> (i32, i32, i32) {
    %c0_i32 = arith.constant 0 : i32
    %c0_i32_0 = arith.constant 0 : i32
    %c0_i32_1 = arith.constant 0 : i32
    return %arg0, %c0_i32, %c0_i32_0 : i32, i32, i32
  }
  func.func @transform_1(%arg0: i32) -> (i32, i32) {
    %c0_i32 = arith.constant 0 : i32
    %c0_i32_0 = arith.constant 0 : i32
    %c0_i32_1 = arith.constant 0 : i32
    return %c0_i32, %c0_i32_0 : i32, i32
  }
  func.func @transform_2(%arg0: i32) -> (i32, i32, i32) {
    %c0_i32 = arith.constant 0 : i32
    %c0_i32_0 = arith.constant 0 : i32
    %c0_i32_1 = arith.constant 0 : i32
    %c0_i32_2 = arith.constant 0 : i32
    return %c0_i32, %c0_i32_0, %c0_i32_1 : i32, i32, i32
  }
  func.func @transform_3(%arg0: i32) -> (i32, i32) {
    %c0_i32 = arith.constant 0 : i32
    %c0_i32_0 = arith.constant 0 : i32
    %c0_i32_1 = arith.constant 0 : i32
    return %c0_i32, %c0_i32_0 : i32, i32
  }
  func.func @transform_4(%arg0: i32) -> (i32, i32, i32) {
    %c0_i32 = arith.constant 0 : i32
    %c0_i32_0 = arith.constant 0 : i32
    %c0_i32_1 = arith.constant 0 : i32
    return %arg0, %c0_i32, %c0_i32_0 : i32, i32, i32
  }
  func.func @transform_5(%arg0: i32) -> (i32, i32) {
    %c0_i32 = arith.constant 0 : i32
    %c0_i32_0 = arith.constant 0 : i32
    %c0_i32_1 = arith.constant 0 : i32
    return %c0_i32, %c0_i32_0 : i32, i32
  }
}

</mosaic_0001>

<bundles_post_ra>
// kernel: tpu_custom_call.1
= control target key start
LH: loop header
LB: loop body
LE: loop exit
PB: predicated region body
PF: predicated region fallthrough
CT: control target
= control target key end

     0   :  { %11 = vsyncpa [#allocation3], 0  ;;  %s641_s0 = inlined_call_operand.vmem [shape: f32[1,8,128], index: 0, kind: input, shape index: {}]   ;;  %s642_s1 = inlined_call_operand.hbm [shape: f32[8,128], index: 1, kind: input, shape index: {}, may-alias: {1,5}]   ;;  %s643_s2 = inlined_call_operand.hbm [shape: f32[8,128,128], index: 2, kind: input, shape index: {}]   ;;  %s644_s3 = inlined_call_operand.vmem [shape: f32[8,128], index: 3, kind: input, shape index: {}]   ;;  %s645_s4 = inlined_call_operand.hbm [shape: f32[1,8,128], index: 4, kind: output, shape index: {0}]   ;;  %s646_s5 = inlined_call_operand.hbm [shape: f32[8,128], index: 5, kind: output, shape index: {1}, may-alias: {1,5}]  }
   0x1   :  { %12 = vsyncpa [#allocation6], 0 }
   0x2   :  { %13 = vsyncpa [#allocation4], 0 }
   0x3   :  { %14 = vsyncpa [#allocation9], 0  ;;  %s22_s20 = sshll.u32 %s642_s1, 4  ;;  %s571_s21 = smov [#allocation2]   ;;  %s23_s20 = int_to_ptr.hbm [resolvable:$true] %s22_s20 }
   0x4   :  { %s24_s22 = sshll.u32 %s571_s21, 4  ;;  %s32_s25 = sshll.u32 %s643_s2, 4  ;;  %s25_s22 = int_to_ptr.vmem [resolvable:$true] %s24_s22  ;;  %s33_s25 = int_to_ptr.hbm [resolvable:$true] %s32_s25 }
   0x5   :  { %27 = dma.hbm_to_vmem [thread:$0]  %s23_s20, 128, %s25_s22, [#allocation3]  }
   0x6   :  { %s572_s26 = smov [#allocation5]   ;;  %s573_s28 = smov 128  }
   0x7   :  { %s34_s27 = sshll.u32 %s572_s26, 4  ;;  %s574_s29 = smov 8   ;;  %s35_s27 = int_to_ptr.vmem [resolvable:$true] %s34_s27 }
   0x8   :  { %40 = dma.hbm_to_vmem [thread:$0]  %s33_s25, 16384, %s35_s27, [#allocation6], %s573_s28, %s573_s28, %s574_s29  }
   0x9   :  { %563 = dma.done.wait [#allocation3], 128  }
   0xa   :  { %564 = vsyncadd [#allocation3], 4294967168 }
   0xb   :  { %565 = dma.done.wait [#allocation6], 16384  }
   0xc   :  { %566 = vsyncadd [#allocation6], 4294950912  ;;  %v75_v0 = vld [vmem:[#allocation5 + $0x78] sm:$0xff]  ;;  %v74_v1 = vld [vmem:[#allocation5 + $0x70] sm:$0xff]  ;;  %s433_s9 = sshll.u32 %s646_s5, 4  ;;  %s576_s10 = smov [#allocation7]   ;;  %s434_s9 = int_to_ptr.hbm [resolvable:$true] %s433_s9 }
   0xd   :  { %77 = vmatpush.msra.mxu0 %v75_v0  ;;  %v73_v2 = vld [vmem:[#allocation5 + $0x68] sm:$0xff]  ;;  %v72_v3 = vld [vmem:[#allocation5 + $0x60] sm:$0xff]  ;;  %v152_v4 = vld [vmem:[#allocation5 + $0x278] sm:$0xff]  ;;  %s420_s11 = sshll.u32 %s576_s10, 4  ;;  %s422_s14 = sshll.u32 %s645_s4, 4  ;;  %s421_s11 = int_to_ptr.vmem [resolvable:$true] %s420_s11  ;;  %s423_s14 = int_to_ptr.hbm [resolvable:$true] %s422_s14 }
   0xe   :  { %v71_v5 = vld [vmem:[#allocation5 + $0x58] sm:$0xff]  ;;  %153 = vmatpush.msra.mxu2 %v152_v4  ;;  %v151_v6 = vld [vmem:[#allocation5 + $0x270] sm:$0xff]  ;;  %v150_v7 = vld [vmem:[#allocation5 + $0x268] sm:$0xff] }
   0xf   :  { %78 = vmatpush.msra.mxu0 %v74_v1  ;;  %v70_v8 = vld [vmem:[#allocation5 + $0x50] sm:$0xff]  ;;  %v149_v9 = vld [vmem:[#allocation5 + $0x260] sm:$0xff]  ;;  %v69_v10 = vld [vmem:[#allocation5 + $0x48] sm:$0xff] }
  0x10   :  { %154 = vmatpush.msra.mxu2 %v151_v6  ;;  %v148_v11 = vld [vmem:[#allocation5 + $0x258] sm:$0xff]  ;;  %v68_v14 = vld [vmem:[#allocation5 + $0x40] sm:$0xff]  ;;  %v113_v15 = vld [vmem:[#allocation5 + $0xf0] sm:$0xff] }
  0x11   :  { %79 = vmatpush.msra.mxu0 %v73_v2  ;;  %v114_v12 = vld [vmem:[#allocation5 + $0xf8] sm:$0xff]  ;;  %v210_v16 = vld [vmem:[#allocation5 + $0x170] sm:$0xff]  ;;  %v112_v18 = vld [vmem:[#allocation5 + $0xe8] sm:$0xff] }
  0x12   :  { %155 = vmatpush.msra.mxu2 %v150_v7  ;;  %v211_v13 = vld [vmem:[#allocation5 + $0x178] sm:$0xff]  ;;  %116 = vmatpush.msra.mxu1 %v114_v12  ;;  %v147_v17 = vld [vmem:[#allocation5 + $0x250] sm:$0xff]  ;;  %v209_v20 = vld [vmem:[#allocation5 + $0x168] sm:$0xff] }
  0x13   :  { %80 = vmatpush.msra.mxu0 %v72_v3  ;;  %213 = vmatpush.msra.mxu3 %v211_v13  ;;  %v67_v19 = vld [vmem:[#allocation5 + $0x38] sm:$0xff]  ;;  %v146_v21 = vld [vmem:[#allocation5 + $0x248] sm:$0xff]  ;;  %v111_v22 = vld [vmem:[#allocation5 + $0xe0] sm:$0xff] }
  0x14   :  { %156 = vmatpush.msra.mxu2 %v149_v9  ;;  %117 = vmatpush.msra.mxu1 %v113_v15  ;;  %v66_v23 = vld [vmem:[#allocation5 + $0x30] sm:$0xff]  ;;  %v208_v24 = vld [vmem:[#allocation5 + $0x160] sm:$0xff]  ;;  %v110_v26 = vld [vmem:[#allocation5 + $0xd8] sm:$0xff] }
  0x15   :  { %81 = vmatpush.msra.mxu0 %v71_v5  ;;  %214 = vmatpush.msra.mxu3 %v210_v16  ;;  %v145_v25 = vld [vmem:[#allocation5 + $0x240] sm:$0xff]  ;;  %v65_v27 = vld [vmem:[#allocation5 + $0x28] sm:$0xff]  ;;  %v207_v28 = vld [vmem:[#allocation5 + $0x158] sm:$0xff] }
  0x16   :  { %157 = vmatpush.msra.mxu2 %v148_v11  ;;  %118 = vmatpush.msra.mxu1 %v112_v18  ;;  %v144_v29 = vld [vmem:[#allocation5 + $0x238] sm:$0xff]  ;;  %v109_v30 = vld [vmem:[#allocation5 + $0xd0] sm:$0xff]  ;;  %v64_v31 = vld [vmem:[#allocation5 + $0x20] sm:$0xff] }
  0x17   :  { %82 = vmatpush.msra.mxu0 %v70_v8  ;;  %215 = vmatpush.msra.mxu3 %v209_v20  ;;  %v206_v32 = vld [vmem:[#allocation5 + $0x150] sm:$0xff]  ;;  %v108_v34 = vld [vmem:[#allocation5 + $0xc8] sm:$0xff]  ;;  %v63_v35 = vld [vmem:[#allocation5 + $0x18] sm:$0xff] }
  0x18   :  { %158 = vmatpush.msra.mxu2 %v147_v17  ;;  %119 = vmatpush.msra.mxu1 %v111_v22  ;;  %v143_v33 = vld [vmem:[#allocation5 + $0x230] sm:$0xff]  ;;  %v205_v36 = vld [vmem:[#allocation5 + $0x148] sm:$0xff]  ;;  %v107_v38 = vld [vmem:[#allocation5 + $0xc0] sm:$0xff] }
  0x19   :  { %83 = vmatpush.msra.mxu0 %v69_v10  ;;  %216 = vmatpush.msra.mxu3 %v208_v24  ;;  %v142_v37 = vld [vmem:[#allocation5 + $0x228] sm:$0xff]  ;;  %v62_v39 = vld [vmem:[#allocation5 + $0x10] sm:$0xff]  ;;  %v204_v40 = vld [vmem:[#allocation5 + $0x140] sm:$0xff] }
  0x1a   :  { %159 = vmatpush.msra.mxu2 %v146_v21  ;;  %120 = vmatpush.msra.mxu1 %v110_v26  ;;  %v141_v41 = vld [vmem:[#allocation5 + $0x220] sm:$0xff]  ;;  %v106_v42 = vld [vmem:[#allocation5 + $0xb8] sm:$0xff]  ;;  %v61_v43 = vld [vmem:[#allocation5 + $0x8] sm:$0xff] }
  0x1b   :  { %84 = vmatpush.msra.mxu0 %v68_v14  ;;  %217 = vmatpush.msra.mxu3 %v207_v28  ;;  %v203_v44 = vld [vmem:[#allocation5 + $0x138] sm:$0xff]  ;;  %v105_v46 = vld [vmem:[#allocation5 + $0xb0] sm:$0xff]  ;;  %v60_v47 = vld [vmem:[#allocation5] sm:$0xff] }
  0x1c   :  { %160 = vmatpush.msra.mxu2 %v145_v25  ;;  %121 = vmatpush.msra.mxu1 %v109_v30  ;;  %v140_v45 = vld [vmem:[#allocation5 + $0x218] sm:$0xff]  ;;  %v202_v48 = vld [vmem:[#allocation5 + $0x130] sm:$0xff]  ;;  %v104_v52 = vld [vmem:[#allocation5 + $0xa8] sm:$0xff] }
  0x1d   :  { %85 = vmatpush.msra.mxu0 %v67_v19  ;;  %218 = vmatpush.msra.mxu3 %v206_v32  ;;  %v57_v49 = vld [vmem:[%s641_s0] sm:$0xff]  ;;  %v139_v50 = vld [vmem:[#allocation5 + $0x210] sm:$0xff]  ;;  %v138_v53 = vld [vmem:[#allocation5 + $0x208] sm:$0xff] }
  0x1e   :  { %161 = vmatpush.msra.mxu2 %v144_v29  ;;  %122 = vmatpush.msra.mxu1 %v108_v34  ;;  %v249_v51 = vld [vmem:[#allocation5 + $0x2f8] sm:$0xff]  ;;  %v201_v54 = vld [vmem:[#allocation5 + $0x128] sm:$0xff]  ;;  %v248_v55 = vld [vmem:[#allocation5 + $0x2f0] sm:$0xff] }
  0x1f   :  { %86 = vmatpush.msra.mxu0 %v66_v23  ;;  %219 = vmatpush.msra.mxu3 %v205_v36  ;;  %v103_v56 = vld [vmem:[#allocation5 + $0xa0] sm:$0xff]  ;;  %v346_v59 = vld [vmem:[#allocation5 + $0x1f8] sm:$0xff]  ;;  %v247_v60 = vld [vmem:[#allocation5 + $0x2e8] sm:$0xff] }
  0x20   :  { %162 = vmatpush.msra.mxu2 %v143_v33  ;;  %123 = vmatpush.msra.mxu1 %v107_v38  ;;  %v137_v57 = vld [vmem:[#allocation5 + $0x200] sm:$0xff]  ;;  %v616_v61 = vld [vmem:[#allocation2] sm:$0xff]  ;;  %v345_v63 = vld [vmem:[#allocation5 + $0x1f0] sm:$0xff] }
  0x21   :  { %87 = vmatpush.msra.mxu0 %v65_v27  ;;  %220 = vmatpush.msra.mxu3 %v204_v40  ;;  %v200_v58 = vld [vmem:[#allocation5 + $0x120] sm:$0xff]  ;;  %v102_v62 = vld [vmem:[#allocation5 + $0x98] sm:$0xff]  ;;  %v344_v2 = vld [vmem:[#allocation5 + $0x1e8] sm:$0xff] }
  0x22   :  { %163 = vmatpush.msra.mxu2 %v142_v37  ;;  %124 = vmatpush.msra.mxu1 %v106_v42  ;;  %v246_v0 = vld [vmem:[#allocation5 + $0x2e0] sm:$0xff]  ;;  %v199_v1 = vld [vmem:[#allocation5 + $0x118] sm:$0xff]  ;;  %v244_v5 = vld [vmem:[#allocation5 + $0x2d0] sm:$0xff] }
  0x23   :  { %88 = vmatpush.msra.mxu0 %v64_v31  ;;  %221 = vmatpush.msra.mxu3 %v203_v44  ;;  %v245_v3 = vld [vmem:[#allocation5 + $0x2d8] sm:$0xff]  ;;  %v343_v4 = vld [vmem:[#allocation5 + $0x1e0] sm:$0xff]  ;;  %v243_v7 = vld [vmem:[#allocation5 + $0x2c8] sm:$0xff] }
  0x24   :  { %164 = vmatpush.msra.mxu2 %v141_v41  ;;  %125 = vmatpush.msra.mxu1 %v105_v46  ;;  %v342_v6 = vld [vmem:[#allocation5 + $0x1d8] sm:$0xff]  ;;  %v341_v8 = vld [vmem:[#allocation5 + $0x1d0] sm:$0xff]  ;;  %v242_v9 = vld [vmem:[#allocation5 + $0x2c0] sm:$0xff] }
  0x25   :  { %89 = vmatpush.msra.mxu0 %v63_v35  ;;  %222 = vmatpush.msra.mxu3 %v202_v48  ;;  %v340_v10 = vld [vmem:[#allocation5 + $0x1c8] sm:$0xff]  ;;  %v241_v11 = vld [vmem:[#allocation5 + $0x2b8] sm:$0xff]  ;;  %v339_v12 = vld [vmem:[#allocation5 + $0x1c0] sm:$0xff] }
  0x26   :  { %165 = vmatpush.msra.mxu2 %v140_v45  ;;  %126 = vmatpush.msra.mxu1 %v104_v52  ;;  %v338_v13 = vld [vmem:[#allocation5 + $0x1b8] sm:$0xff]  ;;  %v337_v14 = vld [vmem:[#allocation5 + $0x1b0] sm:$0xff]  ;;  %v336_v15 = vld [vmem:[#allocation5 + $0x1a8] sm:$0xff] }
  0x27   :  { %90 = vmatpush.msra.mxu0 %v62_v39  ;;  %223 = vmatpush.msra.mxu3 %v201_v54  ;;  %v335_v16 = vld [vmem:[#allocation5 + $0x1a0] sm:$0xff]  ;;  %v334_v17 = vld [vmem:[#allocation5 + $0x198] sm:$0xff]  ;;  %v101_v18 = vld [vmem:[#allocation5 + $0x90] sm:$0xff] }
  0x28   :  { %166 = vmatpush.msra.mxu2 %v139_v50  ;;  %127 = vmatpush.msra.mxu1 %v103_v56  ;;  %v198_v19 = vld [vmem:[#allocation5 + $0x110] sm:$0xff]  ;;  %v100_v22 = vld [vmem:[#allocation5 + $0x88] sm:$0xff]  ;;  %v99_v26 = vld [vmem:[#allocation5 + $0x80] sm:$0xff] }
  0x29   :  { %91 = vmatpush.msra.mxu0 %v61_v43  ;;  %224 = vmatpush.msra.mxu3 %v200_v58  ;;  %v240_v20 = vld [vmem:[#allocation5 + $0x2b0] sm:$0xff]  ;;  %v197_v23 = vld [vmem:[#allocation5 + $0x108] sm:$0xff]  ;;  %v196_v27 = vld [vmem:[#allocation5 + $0x100] sm:$0xff] }
  0x2a   :  { %167 = vmatpush.msra.mxu2 %v138_v53  ;;  %128 = vmatpush.msra.mxu1 %v102_v62  ;;  %v333_v21 = vld [vmem:[#allocation5 + $0x190] sm:$0xff]  ;;  %v239_v24 = vld [vmem:[#allocation5 + $0x2a8] sm:$0xff]  ;;  %v238_v28 = vld [vmem:[#allocation5 + $0x2a0] sm:$0xff] }
  0x2b   :  { %92 = vmatpush.msra.mxu0 %v60_v47  ;;  %225 = vmatpush.msra.mxu3 %v199_v1  ;;  %v332_v25 = vld [vmem:[#allocation5 + $0x188] sm:$0xff]  ;;  %v331_v29 = vld [vmem:[#allocation5 + $0x180] sm:$0xff]  ;;  %v237_v30 = vld [vmem:[#allocation5 + $0x298] sm:$0xff] }
  0x2c   :  { %93 = vmatmul.f32.vlgmr.msra.gmra.mxu0 %v57_v49  ;;  %168 = vmatpush.msra.mxu2 %v137_v57  ;;  %v308_v31 = vld [vmem:[#allocation5 + $0x378] sm:$0xff]  ;;  %v236_v32 = vld [vmem:[#allocation5 + $0x290] sm:$0xff]  ;;  %v235_v34 = vld [vmem:[#allocation5 + $0x288] sm:$0xff] }
  0x2d   :  { %250 = vmatpush.msrb.mxu0 %v249_v51  ;;  %169 = vmatmul.f32.vlgmr.msra.gmra.mxu2 %v616_v61  ;;  %v307_v33 = vld [vmem:[#allocation5 + $0x370] sm:$0xff]  ;;  %v306_v35 = vld [vmem:[#allocation5 + $0x368] sm:$0xff]  ;;  %v234_v36 = vld [vmem:[#allocation5 + $0x280] sm:$0xff] }
  0x2e   :  { %348 = vmatpush.msrb.mxu2 %v346_v59  ;;  %129 = vmatpush.msra.mxu1 %v101_v18  ;;  %v305_v37 = vld [vmem:[#allocation5 + $0x360] sm:$0xff]  ;;  %v304_v38 = vld [vmem:[#allocation5 + $0x358] sm:$0xff]  ;;  %v303_v39 = vld [vmem:[#allocation5 + $0x350] sm:$0xff] }
  0x2f   :  { %251 = vmatpush.msrb.mxu0 %v248_v55  ;;  %226 = vmatpush.msra.mxu3 %v198_v19  ;;  %v302_v40 = vld [vmem:[#allocation5 + $0x348] sm:$0xff]  ;;  %v301_v41 = vld [vmem:[#allocation5 + $0x340] sm:$0xff]  ;;  %v300_v42 = vld [vmem:[#allocation5 + $0x338] sm:$0xff] }
  0x30   :  { %349 = vmatpush.msrb.mxu2 %v345_v63  ;;  %130 = vmatpush.msra.mxu1 %v100_v22  ;;  %v299_v43 = vld [vmem:[#allocation5 + $0x330] sm:$0xff]  ;;  %v298_v44 = vld [vmem:[#allocation5 + $0x328] sm:$0xff]  ;;  %v623_v45 = vld [vmem:[%s644_s3] sm:$0xff]  ;;  %s575_s3 = smov [#allocation8]  }
  0x31   :  { %252 = vmatpush.msrb.mxu0 %v247_v60  ;;  %227 = vmatpush.msra.mxu3 %v197_v23  ;;  %v297_v46 = vld [vmem:[#allocation5 + $0x320] sm:$0xff]  ;;  %v296_v47 = vld [vmem:[#allocation5 + $0x318] sm:$0xff]  ;;  %v76_v48 = vperm.slane %v623_v45, 0  ;;  %v295_v49 = vld [vmem:[#allocation5 + $0x310] sm:$0xff]  ;;  %v115_v60 = vperm.slane %v623_v45, 1  ;;  %s431_s6 = sshll.u32 %s575_s3, 4  ;;  %s432_s6 = int_to_ptr.vmem [resolvable:$true] %s431_s6 }
  0x32   :  { %350 = vmatpush.msrb.mxu2 %v344_v2  ;;  %131 = vmatpush.msra.mxu1 %v99_v26  ;;  %v294_v51 = vld [vmem:[#allocation5 + $0x308] sm:$0xff]  ;;  %v293_v54 = vld [vmem:[#allocation5 + $0x300] sm:$0xff]  ;;  %v391_v55 = vld [vmem:[#allocation5 + $0x3f8] sm:$0xff]  ;;  %v174_v2 = vperm.slane %v623_v45, 4 }
  0x33   :  { %253 = vmatpush.msrb.mxu0 %v246_v0  ;;  %228 = vmatpush.msra.mxu3 %v196_v27  ;;  %v390_v56 = vld [vmem:[#allocation5 + $0x3f0] sm:$0xff]  ;;  %v389_v57 = vld [vmem:[#allocation5 + $0x3e8] sm:$0xff]  ;;  %v388_v58 = vld [vmem:[#allocation5 + $0x3e0] sm:$0xff] }
  0x34   :  { %351 = vmatpush.msrb.mxu2 %v343_v4  ;;  %310 = vmatpush.msrb.mxu1 %v308_v31  ;;  %v387_v59 = vld [vmem:[#allocation5 + $0x3d8] sm:$0xff]  ;;  %v386_v62 = vld [vmem:[#allocation5 + $0x3d0] sm:$0xff]  ;;  %v385_v63 = vld [vmem:[#allocation5 + $0x3c8] sm:$0xff]  ;;  %v309_v31 = vperm.slane %v623_v45, 6 }
  0x35   :  { %254 = vmatpush.msrb.mxu0 %v245_v3  ;;  %393 = vmatpush.msrb.mxu3 %v391_v55  ;;  %v384_v3 = vld [vmem:[#allocation5 + $0x3c0] sm:$0xff]  ;;  %v379_v18 = vld [vmem:[#allocation5 + $0x398] sm:$0xff]  ;;  %v377_v22 = vld [vmem:[#allocation5 + $0x388] sm:$0xff] }
  0x36   :  { %352 = vmatpush.msrb.mxu2 %v342_v6  ;;  %311 = vmatpush.msrb.mxu1 %v307_v33  ;;  %v212_v6 = vperm.slane %v623_v45, 2 }
  0x37   :  { %255 = vmatpush.msrb.mxu0 %v244_v5  ;;  %394 = vmatpush.msrb.mxu3 %v390_v56 }
  0x38   :  { %353 = vmatpush.msrb.mxu2 %v341_v8  ;;  %312 = vmatpush.msrb.mxu1 %v306_v35 }
  0x39   :  { %256 = vmatpush.msrb.mxu0 %v243_v7  ;;  %395 = vmatpush.msrb.mxu3 %v389_v57  ;;  %v383_v7 = vld [vmem:[#allocation5 + $0x3b8] sm:$0xff] }
  0x3a   :  { %354 = vmatpush.msrb.mxu2 %v340_v10  ;;  %313 = vmatpush.msrb.mxu1 %v305_v37  ;;  %v347_v37 = vperm.slane %v623_v45, 3 }
  0x3b   :  { %257 = vmatpush.msrb.mxu0 %v242_v9  ;;  %396 = vmatpush.msrb.mxu3 %v388_v58  ;;  %v382_v9 = vld [vmem:[#allocation5 + $0x3b0] sm:$0xff] }
  0x3c   :  { %355 = vmatpush.msrb.mxu2 %v339_v12  ;;  %314 = vmatpush.msrb.mxu1 %v304_v38 }
  0x3d   :  { %258 = vmatpush.msrb.mxu0 %v241_v11  ;;  %397 = vmatpush.msrb.mxu3 %v387_v59 }
  0x3e   :  { %356 = vmatpush.msrb.mxu2 %v338_v13  ;;  %315 = vmatpush.msrb.mxu1 %v303_v39 }
  0x3f   :  { %259 = vmatpush.msrb.mxu0 %v240_v20  ;;  %398 = vmatpush.msrb.mxu3 %v386_v62  ;;  %v378_v20 = vld [vmem:[#allocation5 + $0x390] sm:$0xff] }
  0x40   :  { %357 = vmatpush.msrb.mxu2 %v337_v14  ;;  %316 = vmatpush.msrb.mxu1 %v302_v40  ;;  %v271_v14 = vperm.slane %v623_v45, 5 }
  0x41   :  { %260 = vmatpush.msrb.mxu0 %v239_v24  ;;  %399 = vmatpush.msrb.mxu3 %v385_v63  ;;  %v376_v24 = vld [vmem:[#allocation5 + $0x380] sm:$0xff]  ;;  %v392_v63 = vperm.slane %v623_v45, 7 }
  0x42   :  { %358 = vmatpush.msrb.mxu2 %v336_v15  ;;  %317 = vmatpush.msrb.mxu1 %v301_v41  ;;  %v381_v15 = vld [vmem:[#allocation5 + $0x3a8] sm:$0xff] }
  0x43   :  { %261 = vmatpush.msrb.mxu0 %v238_v28  ;;  %400 = vmatpush.msrb.mxu3 %v384_v3 }
  0x44   :  { %359 = vmatpush.msrb.mxu2 %v335_v16  ;;  %318 = vmatpush.msrb.mxu1 %v300_v42  ;;  %v380_v16 = vld [vmem:[#allocation5 + $0x3a0] sm:$0xff] }
  0x45   :  { %262 = vmatpush.msrb.mxu0 %v237_v30  ;;  %401 = vmatpush.msrb.mxu3 %v383_v7 }
  0x46   :  { %360 = vmatpush.msrb.mxu2 %v334_v17  ;;  %319 = vmatpush.msrb.mxu1 %v299_v43 }
  0x47   :  { %263 = vmatpush.msrb.mxu0 %v236_v32  ;;  %402 = vmatpush.msrb.mxu3 %v382_v9 }
  0x48   :  { %361 = vmatpush.msrb.mxu2 %v333_v21  ;;  %320 = vmatpush.msrb.mxu1 %v298_v44 }
  0x49   :  { %264 = vmatpush.msrb.mxu0 %v235_v34  ;;  %403 = vmatpush.msrb.mxu3 %v381_v15 }
  0x4a   :  { %362 = vmatpush.msrb.mxu2 %v332_v25  ;;  %321 = vmatpush.msrb.mxu1 %v297_v46 }
  0x4b   :  { %265 = vmatpush.msrb.mxu0 %v234_v36  ;;  %404 = vmatpush.msrb.mxu3 %v380_v16 }
  0x4c   :  { %363 = vmatpush.msrb.mxu2 %v331_v29  ;;  %266 = vmatmul.f32.vlgmr.msrb.gmra.mxu0 %v616_v61 }
  0x4d   :  { %322 = vmatpush.msrb.mxu1 %v296_v47  ;;  %405 = vmatpush.msrb.mxu3 %v379_v18 }
  0x4f   :  { %323 = vmatpush.msrb.mxu1 %v295_v49  ;;  %406 = vmatpush.msrb.mxu3 %v378_v20 }
  0x51   :  { %324 = vmatpush.msrb.mxu1 %v294_v51  ;;  %407 = vmatpush.msrb.mxu3 %v377_v22 }
  0x53   :  { %325 = vmatpush.msrb.mxu1 %v293_v54  ;;  %408 = vmatpush.msrb.mxu3 %v376_v24 }
  0xa9   :  { %v94_v50 = vpop.f32.mrf.mxu0 }
  0xaa   :  { %v95_v52 = vadd.f32 %v94_v50, %v76_v48 }
  0xac   :  { %v97_v53 = vmax.f32 %v95_v52, 0.0 }
  0xae   :  { %132 = vmatmul.f32.vlgmr.msra.gmra.mxu1 %v97_v53  ;;  %229 = vmatmul.f32.vlgmr.msra.gmra.mxu3 %v97_v53 }
  0xaf   :  { %364 = vmatmul.f32.vlgmr.msrb.gmra.mxu2 %v97_v53 }
  0xb0   :  { %v170_v4 = vpop.f32.mrf.mxu2 }
  0xb6   :  { %326 = vmatmul.f32.vlgmr.msrb.gmra.mxu1 %v616_v61 }
  0xc9   :  { %v267_v11 = vpop.f32.mrf.mxu0 }
 0x12b   :  { %v133_v0 = vpop.f32.mrf.mxu1 }
 0x12c   :  { %v134_v1 = vadd.f32 %v133_v0, %v115_v60 }
 0x12e   :  { %v173_v5 = vadd.f32 %v170_v4, %v134_v1 }
 0x130   :  { %v175_v8 = vadd.f32 %v174_v2, %v173_v5 }
 0x131   :  { %v230_v10 = vpop.f32.mrf.mxu3 }
 0x132   :  { %v449_v12 = vmul.f32 -1.442695, %v175_v8  ;;  %v231_v13 = vadd.f32 %v230_v10, %v212_v6  ;;  %v365_v38 = vpop.f32.mrf.mxu2 }
 0x133   :  { %v327_v33 = vpop.f32.mrf.mxu1  ;;  %v366_v46 = vadd.f32 %v365_v38, %v347_v37 }
 0x134   :  { %457 = vpow2.f32 %v449_v12  ;;  %v270_v17 = vadd.f32 %v267_v11, %v231_v13  ;;  %v328_v41 = vadd.f32 %v327_v33, %v309_v31 }
 0x136   :  { %v272_v19 = vadd.f32 %v271_v14, %v270_v17 }
 0x138   :  { %v450_v21 = vmul.f32 -1.442695, %v272_v19 }
 0x13a   :  { %v458_v23 = vpop.eup %457  ;;  %459 = vpow2.f32 %v450_v21 }
 0x13b   :  { %v179_v25 = vadd.f32 1.0, %v458_v23 }
 0x13d   :  { %461 = vrcp.f32 %v179_v25  ;;  %v191_v32 = vand.u32 2147483648, %v179_v25  ;;  %v189_v35 = vand.u32 2147483647, %v179_v25  ;;  %vm185_vm1 = vweird.f32 %v179_v25 }
 0x13f   :  { %v192_v42 = vor.u32 1.1754944e-38, %v191_v32  ;;  %vm190_vm3 = vcmp.eq.f32.partialorder %v189_v35, 8.507059e+37 }
 0x140   :  { %v460_v26 = vpop.eup %459 }
 0x141   :  { %v276_v27 = vadd.f32 1.0, %v460_v26 }
 0x143   :  { %v462_v28 = vpop.eup %461  ;;  %463 = vrcp.f32 %v276_v27  ;;  %v288_v50 = vand.u32 2147483648, %v276_v27  ;;  %v286_v51 = vand.u32 2147483647, %v276_v27  ;;  %vm282_vm5 = vweird.f32 %v276_v27 }
 0x144   :  { %v181_v29 = vmul.f32 %v462_v28, %v179_v25  ;;  %vm186_vm0 = vweird.f32 %v462_v28 }
 0x145   :  { %vm187_vm2 = vmor %vm185_vm1, %vm186_vm0  ;;  %v289_v55 = vor.u32 1.1754944e-38, %v288_v50  ;;  %vm287_vm7 = vcmp.eq.f32.partialorder %v286_v51, 8.507059e+37 }
 0x146   :  { %v182_v30 = vsub.f32 1.0, %v181_v29 }
 0x148   :  { %v183_v34 = vmul.f32 %v462_v28, %v182_v30 }
 0x149   :  { %v464_v36 = vpop.eup %463 }
 0x14a   :  { %v278_v39 = vmul.f32 %v464_v36, %v276_v27  ;;  %v184_v40 = vadd.f32 %v462_v28, %v183_v34  ;;  %vm283_vm4 = vweird.f32 %v464_v36 }
 0x14b   :  { %vm284_vm6 = vmor %vm282_vm5, %vm283_vm4 }
 0x14c   :  { %v188_v43 = vsel %vm187_vm2, %v462_v28, %v184_v40  ;;  %v279_v44 = vsub.f32 1.0, %v278_v39 }
 0x14d   :  { %v193_v47 = vsel %vm190_vm3, %v192_v42, %v188_v43 }
 0x14e   :  { %v368_v48 = vmul.f32 %v328_v41, %v193_v47  ;;  %v280_v49 = vmul.f32 %v464_v36, %v279_v44 }
 0x150   :  { %v369_v52 = vadd.f32 %v368_v48, %v366_v46  ;;  %v281_v53 = vadd.f32 %v464_v36, %v280_v49 }
 0x152   :  { %465 = vtanh.f32 %v369_v52  ;;  %v285_v54 = vsel %vm284_vm6, %v464_v36, %v281_v53 }
 0x153   :  { %v290_v56 = vsel %vm287_vm7, %v289_v55, %v285_v54 }
 0x154   :  { %v371_v57 = vsub.f32 1.0, %v290_v56  ;;  %v373_v60 = vmul.f32 %v290_v56, %v616_v61 }
 0x158   :  { %v466_v58 = vpop.eup %465 }
 0x159   :  { %v372_v59 = vmul.f32 %v466_v58, %v371_v57 }
 0x15b   :  { %v374_v62 = vadd.f32 %v373_v60, %v372_v59 }
 0x15d   :  { %409 = vmatmul.f32.vlgmr.msrb.gmra.mxu3 %v374_v62  ;;  %414 = vst [vmem:[#allocation8] sm:$0xff] %v374_v62 }
 0x15e   :  { %436 = dma.vmem_to_hbm [thread:$0]  %s432_s6, 128, %s434_s9, [#allocation9]  }
 0x1e0   :  { %v410_v61 = vpop.f32.mrf.mxu3 }
 0x1e1   :  { %v411_v0 = vadd.f32 %v410_v61, %v392_v63 }
 0x1e3   :  { %413 = vst [vmem:[#allocation7] sm:$0xff] %v411_v0 }
 0x1e4   :  { %425 = dma.vmem_to_hbm [thread:$0]  %s421_s11, 128, %s423_s14, [#allocation4]  }
 0x1e5   :  { %567 = dma.done.wait [#allocation4], 128  }
 0x1e6   :  { %568 = vsyncadd [#allocation4], 4294967168 }
 0x1e7   :  { %569 = dma.done.wait [#allocation9], 128  }
 0x1e8   :  { %570 = vsyncadd [#allocation9], 4294967168 }
 0x1e9   :  { %445 = vsyncpa [#allocation3], 1 }
 0x1ea   :  { %446 = vsyncpa [#allocation6], 1 }
 0x1eb   :  { %447 = vsyncpa [#allocation4], 1 }
 0x1ec   :  { %448 = vsyncpa [#allocation9], 1 }

</bundles_post_ra>
